<compile_context>
chip_gen: v6e
topology: v6e:2x2x1
jax: 0.10.0
libtpu: 0.0.40
codegen_flags: <defaults>
</compile_context>

<pallas_src>
import functools

import jax
import jax.numpy as jnp
from jax.experimental import pallas as pl
from jax.experimental.pallas import tpu as pltpu


def _gcn_agg_kernel(a_ref, xw_ref, b_ref, o_ref, *, apply_relu):
    """Aggregation for one GCNConv layer: out = A_hat @ XW + b (opt. relu).

    Grid = (row_blocks, k_blocks); the contraction (source-node) axis is last.
      a_ref:  (TM, TK)     bf16 tile of A_hat (streamed, double-buffered).
      xw_ref: (TK, C_pad)  bf16 block of the precomputed feature transform.
      b_ref:  (1, C_pad)   f32 bias (VMEM-resident, constant block index).
      o_ref:  (TM, C_pad)  f32 output block == accumulator (constant along k).
    """
    k = pl.program_id(1)

    @pl.when(k == 0)
    def _():
        o_ref[...] = jnp.zeros_like(o_ref)

    # Native bf16 x bf16 MXU matmul, f32 accumulation directly into the
    # (VMEM-resident) output block.
    o_ref[...] += jnp.dot(a_ref[...], xw_ref[...],
                          preferred_element_type=jnp.float32)

    # Bias + activation only once, in the last-k epilogue.
    @pl.when(k == pl.num_programs(1) - 1)
    def _():
        out = o_ref[...] + b_ref[...]
        if apply_relu:
            out = jnp.maximum(out, 0.0)
        o_ref[...] = out


def _pick_tile(n, target, align):
    """Largest multiple of `align` dividing n and <= target; else n (full dim)."""
    if n <= target or n % align != 0:
        return n
    t = (min(target, n) // align) * align
    while t >= align:
        if n % t == 0:
            return t
        t -= align
    return n


def gcn_conv(a_hat_bf16, x, w, b, *, apply_relu, tm=None, tk=None):
    """One GCNConv layer: relu?(A_hat @ (x @ w) + b), streaming A_hat in bf16."""
    n = a_hat_bf16.shape[0]
    c_out = w.shape[1]

    # Feature transform hoisted out of the grid: computed exactly once here,
    # not once per row block inside the kernel.
    xw = jnp.dot(x, w, preferred_element_type=jnp.float32) # (N, C_out) f32

    # Lane-dense output: zero-pad channels to 128 (the MXU pads internally, so
    # the extra columns are free compute; they are sliced off below).
    c_pad = max(128, ((c_out + 127) // 128) * 128)
    if c_pad != c_out:
        xw = jnp.pad(xw, ((0, 0), (0, c_pad - c_out)))
        b = jnp.pad(b, ((0, 0), (0, c_pad - c_out)))
    xw_bf16 = xw.astype(jnp.bfloat16)                       # bf16 MXU operand

    if tm is None:
        tm = _pick_tile(n, 512, 8)      # output row block (sublane axis)
    if tk is None:
        tk = _pick_tile(n, 2048, 128)   # contraction block (lane axis of A tile)
    grid = (n // tm, n // tk)

    kernel = functools.partial(_gcn_agg_kernel, apply_relu=apply_relu)
    out = pl.pallas_call(
        kernel,
        out_shape=jax.ShapeDtypeStruct((n, c_pad), jnp.float32),
        grid_spec=pltpu.PrefetchScalarGridSpec(
            num_scalar_prefetch=0,
            grid=grid,
            in_specs=[
                # A_hat: the dominant streamed operand, (TM, TK) bf16 tiles.
                pl.BlockSpec((tm, tk), lambda i, k: (i, k)),
                # Precomputed XW: (TK, C_pad) bf16 block per contraction step.
                pl.BlockSpec((tk, c_pad), lambda i, k: (k, 0)),
                # Bias: tiny, constant block index -> fetched once, resident.
                pl.BlockSpec((1, c_pad), lambda i, k: (0, 0)),
            ],
            # Constant block index along k -> output is the accumulator.
            out_specs=pl.BlockSpec((tm, c_pad), lambda i, k: (i, 0)),
        ),
        compiler_params=pltpu.CompilerParams(
            # Row blocks are independent (sharded across v7x's 2 TensorCores);
            # the contraction over source-node blocks must stay "arbitrary".
            dimension_semantics=("parallel", "arbitrary"),
            # ~5.5 MiB actually used at (512, 2048); 32 MiB is safe headroom on
            # v5e/v6e and within v7x's 64 MiB physical VMEM.
            vmem_limit_bytes=32 * 1024 * 1024,
        ),
    )(a_hat_bf16, xw_bf16, b)

    return out[:, :c_out] if c_pad != c_out else out


def gcn2_forward(a_hat_bf16, x, w1, b1, w2, b2, *, tm=None, tk=None):
    """Full 2-layer GCN forward (eval mode). a_hat_bf16 is pre-cast bf16."""
    h = gcn_conv(a_hat_bf16, x, w1, b1, apply_relu=True, tm=tm, tk=tk)
    # TODO(synk): F.dropout(p=0.3) only applies when training=True; in eval
    # mode (implemented here) it is the identity.  Training-mode dropout would
    # use pltpu.prng_seed + pltpu.stateful_bernoulli inside the layer-2 kernel.
    o = gcn_conv(a_hat_bf16, h, w2, b2, apply_relu=False, tm=tm, tk=tk)
    return o
    # TODO(synk): on v7x, A_hat could be streamed in fp8 (e4m3) with a scale
    # for another ~2x on the HBM roofline; needs accuracy validation first.


def build_normalized_adjacency(edge_index, edge_weight, num_nodes):
    """Dense normalized adjacency (PyG gcn_norm semantics), returned in bf16.

    Follows add_remaining_self_loops: existing self-loops keep their weight,
    missing ones are added with weight 1.  A_hat[dst, src] = d^-1/2[dst] * w *
    d^-1/2[src], so A_hat @ X aggregates source features into targets.

    Returned directly in bf16 so the forward pass never pays an extra N^2
    f32->bf16 HBM round trip.
    TODO(synk): graphs with *duplicated* self-loop edges are deduped here,
    whereas PyG keeps the duplicates; results differ for such graphs.
    TODO(synk): for large sparse graphs, emit block-CSR + PrefetchScalarGridSpec
    to skip all-zero A_hat tiles (O(nnz) HBM traffic) instead of a dense N^2.
    """
    src = edge_index[0]
    dst = edge_index[1]
    if edge_weight is None:
        edge_weight = jnp.ones(src.shape[0], dtype=jnp.float32)

    is_loop = src == dst
    # Per-node self-loop weight: existing self-loop weight if present, else 1.
    loop_w = jnp.ones((num_nodes,), jnp.float32)
    loop_w = loop_w.at[jnp.where(is_loop, dst, num_nodes)].set(
        edge_weight, mode="drop")
    # Drop existing self-loop edges (re-added below), keep the rest.
    ew = jnp.where(is_loop, 0.0, edge_weight)

    loop = jnp.arange(num_nodes, dtype=src.dtype)
    src_all = jnp.concatenate([src, loop])
    dst_all = jnp.concatenate([dst, loop])
    ew_all = jnp.concatenate([ew, loop_w])

    deg = jnp.zeros((num_nodes,), jnp.float32).at[dst_all].add(ew_all)
    dinv = jnp.where(deg > 0, jax.lax.rsqrt(deg), 0.0)
    norm = dinv[dst_all] * ew_all * dinv[src_all]
    a_hat = jnp.zeros((num_nodes, num_nodes), jnp.float32).at[
        dst_all, src_all].add(norm)
    # TODO(synk): bf16 adjacency introduces ~1e-3-level relative error vs f32
    # PyG GCNConv; keep f32 here if bit-level parity with PyTorch is required.
    return a_hat.astype(jnp.bfloat16)


def glorot(key, shape):
    fan_in, fan_out = shape
    limit = jnp.sqrt(6.0 / (fan_in + fan_out))
    return jax.random.uniform(key, shape, jnp.float32, -limit, limit)


if __name__ == "__main__":
    # Small deterministic problem: 256 nodes, 16 in-features, hidden=64
    # (module default), 2 classes.
    num_nodes = 256
    in_channels = 16
    hidden_channels = 64
    out_channels = 2
    num_edges = 1024

    key = jax.random.PRNGKey(0)
    k_x, k_src, k_dst, k_w1, k_w2 = jax.random.split(key, 5)

    x = jax.random.normal(k_x, (num_nodes, in_channels), jnp.float32)
    edge_index = jnp.stack(
        [
            jax.random.randint(k_src, (num_edges,), 0, num_nodes),
            jax.random.randint(k_dst, (num_edges,), 0, num_nodes),
        ]
    ).astype(jnp.int32)
    edge_weight = None  # defaults to ones, like PyG

    # PyG GCNConv defaults: glorot weights (stored (in, out) so wrappers do
    # X @ W), zero biases.
    w1 = glorot(k_w1, (in_channels, hidden_channels))
    b1 = jnp.zeros((1, hidden_channels), jnp.float32)
    w2 = glorot(k_w2, (hidden_channels, out_channels))
    b2 = jnp.zeros((1, out_channels), jnp.float32)

    a_hat = build_normalized_adjacency(edge_index, edge_weight, num_nodes)

    # Default tiles: single block per layer at N=256 (per-step overhead would
    # otherwise dominate this toy size).
    out = gcn2_forward(a_hat, x, w1, b1, w2, b2)
    out = jax.block_until_ready(out)

    # Also exercise the multi-block accumulation path (2x2 grid) explicitly.
    out_tiled = gcn2_forward(a_hat, x, w1, b1, w2, b2, tm=128, tk=128)
    out_tiled = jax.block_until_ready(out_tiled)

    # Pure-JAX reference with the SAME bf16 quantization of A and of the XW
    # operands the kernel uses (accumulation stays f32).
    a_f = a_hat.astype(jnp.float32)
    xw1_q = (x @ w1).astype(jnp.bfloat16).astype(jnp.float32)
    h_ref = jnp.maximum(a_f @ xw1_q + b1, 0.0)
    xw2_q = (h_ref @ w2).astype(jnp.bfloat16).astype(jnp.float32)
    o_ref = a_f @ xw2_q + b2

    assert out.shape == (num_nodes, out_channels)
    assert jnp.allclose(out, o_ref, atol=5e-3, rtol=5e-3), float(
        jnp.max(jnp.abs(out - o_ref)))
    assert jnp.allclose(out_tiled, o_ref, atol=5e-3, rtol=5e-3), float(
        jnp.max(jnp.abs(out_tiled - o_ref)))

    print("KERNEL_OK")
</pallas_src>

<mosaic_0001>
module attributes {stable_mosaic.version = 11 : i64} {
  func.func @_gcn_agg_kernel(%arg0: i32, %arg1: i32, %arg2: memref<256x256xbf16, #tpu.memory_space<vmem>>, %arg3: memref<256x128xbf16, #tpu.memory_space<vmem>>, %arg4: memref<1x128xf32, #tpu.memory_space<vmem>>, %arg5: memref<256x128xf32, #tpu.memory_space<vmem>>) attributes {dimension_semantics = [#tpu.dimension_semantics<parallel>, #tpu.dimension_semantics<arbitrary>], iteration_bounds = array<i64: 1, 1>, scalar_prefetch = 0 : i64, scratch_operands = 0 : i64, tpu.core_type = #tpu.core_type<tc>, window_params = [{transform_indices = @transform_0, window_bounds = array<i64: 256, 256>}, {transform_indices = @transform_1, window_bounds = array<i64: 256, 128>}, {pipeline_mode = #tpu.pipeline_mode<synchronous>, transform_indices = @transform_2, window_bounds = array<i64: 1, 128>}, {transform_indices = @transform_3, window_bounds = array<i64: 256, 128>}]} {
    %c0_i32 = arith.constant 0 : i32
    %0 = arith.cmpi eq, %arg1, %c0_i32 : i32
    %1 = arith.extui %0 : i1 to i32
    %c0_i32_0 = arith.constant 0 : i32
    %2 = arith.cmpi ne, %1, %c0_i32_0 : i32
    scf.if %2 {
      %cst_10 = arith.constant 0.000000e+00 : f32
      %12 = vector.broadcast %cst_10 : f32 to vector<256x128xf32>
      %c0_11 = arith.constant 0 : index
      %c0_12 = arith.constant 0 : index
      %13 = vector.load %arg5[%c0_11, %c0_12] : memref<256x128xf32, #tpu.memory_space<vmem>>, vector<256x128xf32>
      tpu.vector_store %arg5[%c0_11, %c0_12], %12 {strides = array<i32>} : memref<256x128xf32, #tpu.memory_space<vmem>>, vector<256x128xf32>,
    } else {
    }
    %c0 = arith.constant 0 : index
    %c0_1 = arith.constant 0 : index
    %3 = vector.load %arg5[%c0, %c0_1] : memref<256x128xf32, #tpu.memory_space<vmem>>, vector<256x128xf32>
    %c0_2 = arith.constant 0 : index
    %c0_3 = arith.constant 0 : index
    %4 = vector.load %arg2[%c0_2, %c0_3] : memref<256x256xbf16, #tpu.memory_space<vmem>>, vector<256x256xbf16>
    %c0_4 = arith.constant 0 : index
    %c0_5 = arith.constant 0 : index
    %5 = vector.load %arg3[%c0_4, %c0_5] : memref<256x128xbf16, #tpu.memory_space<vmem>>, vector<256x128xbf16>
    %cst = arith.constant dense<0.000000e+00> : vector<256x128xf32>
    %6 = tpu.matmul %4, %5, %cst {dimension_numbers = #tpu.dot_dimension_numbers<[1], [0], [0], [1], [0, 0, 1, 1], [], []>} : vector<256x256xbf16>, vector<256x128xbf16>, vector<256x128xf32> -> vector<256x128xf32>
    %7 = arith.addf %3, %6 : vector<256x128xf32>
    %c0_6 = arith.constant 0 : index
    %c0_7 = arith.constant 0 : index
    %8 = vector.load %arg5[%c0_6, %c0_7] : memref<256x128xf32, #tpu.memory_space<vmem>>, vector<256x128xf32>
    tpu.vector_store %arg5[%c0_6, %c0_7], %7 {strides = array<i32>} : memref<256x128xf32, #tpu.memory_space<vmem>>, vector<256x128xf32>,
    %c0_i32_8 = arith.constant 0 : i32
    %9 = arith.cmpi eq, %arg1, %c0_i32_8 : i32
    %10 = arith.extui %9 : i1 to i32
    %c0_i32_9 = arith.constant 0 : i32
    %11 = arith.cmpi ne, %10, %c0_i32_9 : i32
    scf.if %11 {
      %c0_10 = arith.constant 0 : index
      %c0_11 = arith.constant 0 : index
      %12 = vector.load %arg5[%c0_10, %c0_11] : memref<256x128xf32, #tpu.memory_space<vmem>>, vector<256x128xf32>
      %c0_12 = arith.constant 0 : index
      %c0_13 = arith.constant 0 : index
      %13 = vector.load %arg4[%c0_12, %c0_13] : memref<1x128xf32, #tpu.memory_space<vmem>>, vector<1x128xf32>
      %14 = vector.broadcast %13 : vector<1x128xf32> to vector<256x128xf32>
      %15 = arith.addf %12, %14 : vector<256x128xf32>
      %cst_14 = arith.constant 0.000000e+00 : f32
      %16 = vector.broadcast %cst_14 : f32 to vector<256x128xf32>
      %17 = arith.maximumf %15, %16 : vector<256x128xf32>
      %c0_15 = arith.constant 0 : index
      %c0_16 = arith.constant 0 : index
      %18 = vector.load %arg5[%c0_15, %c0_16] : memref<256x128xf32, #tpu.memory_space<vmem>>, vector<256x128xf32>
      tpu.vector_store %arg5[%c0_15, %c0_16], %17 {strides = array<i32>} : memref<256x128xf32, #tpu.memory_space<vmem>>, vector<256x128xf32>,
    } else {
    }
    return
  }
  func.func @transform_0(%arg0: i32, %arg1: i32) -> (i32, i32) {
    %c0_i32 = arith.constant 0 : i32
    return %arg0, %arg1 : i32, i32
  }
  func.func @transform_1(%arg0: i32, %arg1: i32) -> (i32, i32) {
    %c0_i32 = arith.constant 0 : i32
    %c0_i32_0 = arith.constant 0 : i32
    return %arg1, %c0_i32 : i32, i32
  }
  func.func @transform_2(%arg0: i32, %arg1: i32) -> (i32, i32) {
    %c0_i32 = arith.constant 0 : i32
    %c0_i32_0 = arith.constant 0 : i32
    %c0_i32_1 = arith.constant 0 : i32
    return %c0_i32, %c0_i32_0 : i32, i32
  }
  func.func @transform_3(%arg0: i32, %arg1: i32) -> (i32, i32) {
    %c0_i32 = arith.constant 0 : i32
    %c0_i32_0 = arith.constant 0 : i32
    return %arg0, %c0_i32 : i32, i32
  }
}

</mosaic_0001>

<bundles_post_ra>
// kernel: tpu_custom_call.1
= control target key start
LH: loop header
LB: loop body
LE: loop exit
PB: predicated region body
PF: predicated region fallthrough
CT: control target
= control target key end

     0   :  { %8 = vsyncpa [#allocation3], 0  ;;  %s1207_s0 = inlined_call_operand.hbm [shape: bf16[256,256], index: 0, kind: input, shape index: {}]   ;;  %s1208_s1 = inlined_call_operand.hbm [shape: bf16[256,128], index: 1, kind: input, shape index: {}]   ;;  %s1209_s2 = inlined_call_operand.vmem [shape: f32[1,128], index: 2, kind: input, shape index: {}]   ;;  %s1210_s3 = inlined_call_operand.hbm [shape: f32[256,128], index: 3, kind: output, shape index: {}]  }
   0x1   :  { %9 = vsyncpa [#allocation6], 0 }
   0x2   :  { %10 = vsyncpa [#allocation4], 0  ;;  %s1128_s12 = smov [#allocation2]  }
   0x3   :  { %s16_s13 = sshll.u32 %s1128_s12, 4  ;;  %s17_s13 = int_to_ptr.vmem [resolvable:$true] %s16_s13 }
   0x4   :  { %s1070_s14 = scalar_lea.vmem %s17_s13, 4096  ;;  %p1075_p1 = scmp.lt.s32.totalorder %s17_s13, %s17_s13 }
   0x5   :  { %p1071_p0 = scmp.ne.s32.totalorder %s17_s13, %s1070_s14  ;;  %p1076_p2 = scmp.lt.s32.totalorder %s1070_s14, %s1070_s14 }
   0x7   :  { %p1077_p3 = por %p1076_p2, %p1075_p1 }
   0x9   :  { %p1078_p4 = pnand %p1077_p3, %p1071_p0 }
   0xb   :  { %1081 = shalt.err (!%p1078_p4)
}
   0xc   :  { %s1129_s15 = smov 128   ;;  %s1130_s16 = smov 8  }
   0xd   :  { %22 = dma.hbm_to_vmem [thread:$0]  %s1207_s0, 4096, %s17_s13, [#allocation3], %s1129_s15, %s1129_s15, %s1130_s16  }
   0xe   :  { %s1131_s19 = smov [#allocation5]  }
   0xf   :  { %s28_s20 = sshll.u32 %s1131_s19, 4  ;;  %s29_s20 = int_to_ptr.vmem [resolvable:$true] %s28_s20 }
  0x10   :  { %s1090_s21 = scalar_lea.vmem %s29_s20, 2048  ;;  %p1095_p6 = scmp.lt.s32.totalorder %s29_s20, %s29_s20 }
  0x11   :  { %p1091_p5 = scmp.ne.s32.totalorder %s29_s20, %s1090_s21  ;;  %p1096_p7 = scmp.lt.s32.totalorder %s1090_s21, %s1090_s21 }
  0x13   :  { %p1097_p8 = por %p1096_p7, %p1095_p6 }
  0x15   :  { %p1098_p9 = pnand %p1097_p8, %p1091_p5 }
  0x17   :  { %1101 = shalt.err (!%p1098_p9)
}
  0x18   :  { %s1132_s22 = smov 64   ;;  %s1133_s23 = smov 4  }
  0x19   :  { %34 = dma.hbm_to_vmem [thread:$0]  %s1208_s1, 2048, %s29_s20, [#allocation6], %s1132_s22, %s1132_s22, %s1133_s23  }
  0x1a   :  { %1122 = dma.done.wait [#allocation3], 4096  }
  0x1b   :  { %1123 = vsyncadd [#allocation3], 4294963200 }
  0x1c   :  { %1124 = dma.done.wait [#allocation6], 2048  }
  0x1d   :  { %1125 = vsyncadd [#allocation6], 4294965248  ;;  %v998_v0 = vld [vmem:[#allocation5 + $0x78] sm:$0xff]   ;;  %v1000_v2 = vld [vmem:[#allocation5 + $0x70] sm:$0xff]  }
  0x1e   :  { %v999_v1 = vld [vmem:[#allocation5 + $0x38] sm:$0xff]   ;;  %862 = vmatprep.subr.bf16.mxu0 %v998_v0  ;;  %974 = vmatprep.subr.bf16.mxu1 %v998_v0  ;;  %v1001_v3 = vld [vmem:[#allocation5 + $0x30] sm:$0xff]   ;;  %v1002_v4 = vld [vmem:[#allocation5 + $0x68] sm:$0xff]  }
  0x1f   :  { %863 = vmatpush3.bf16.msra.mxu0 %v999_v1  ;;  %982 = vmatpush3.bf16.msra.mxu1 %v999_v1  ;;  %v1003_v5 = vld [vmem:[#allocation5 + $0x28] sm:$0xff]   ;;  %v1004_v6 = vld [vmem:[#allocation5 + $0x60] sm:$0xff]   ;;  %v1006_v8 = vld [vmem:[#allocation5 + $0x58] sm:$0xff]  }
  0x20   :  { %864 = vmatprep.subr.bf16.mxu0 %v1000_v2  ;;  %975 = vmatprep.subr.bf16.mxu1 %v1000_v2  ;;  %v1005_v7 = vld [vmem:[#allocation5 + $0x20] sm:$0xff]   ;;  %v1007_v9 = vld [vmem:[#allocation5 + $0x18] sm:$0xff]   ;;  %v1008_v10 = vld [vmem:[#allocation5 + $0x50] sm:$0xff]  }
  0x21   :  { %v1016_v11 = vld [vmem:[#allocation2 + $0x4] ss:$8 sps:$4 sm:$0xff]   ;;  %v1009_v13 = vld [vmem:[#allocation5 + $0x10] sm:$0xff]   ;;  %v1014_v18 = vld [vmem:[#allocation2] ss:$8 sps:$4 sm:$0xff]  }
  0x22   :  { %v1019_v12 = vld [vmem:[#allocation2 + $0x84] ss:$8 sps:$4 sm:$0xff]   ;;  %464 = vmatprep.mubr.bf16.mxu0 %v1016_v11  ;;  %v1017_v19 = vld [vmem:[#allocation2 + $0x80] ss:$8 sps:$4 sm:$0xff]   ;;  %v1020_v20 = vld [vmem:[#allocation2 + $0x14] ss:$8 sps:$4 sm:$0xff]  }
  0x23   :  { %865 = vmatpush3.bf16.msra.mxu0 %v1001_v3  ;;  %983 = vmatpush3.bf16.msra.mxu1 %v1001_v3  ;;  %v1010_v14 = vld [vmem:[#allocation5 + $0x48] sm:$0xff]   ;;  %v1012_v16 = vld [vmem:[#allocation5 + $0x40] sm:$0xff]   ;;  %v1022_v21 = vld [vmem:[#allocation2 + $0x94] ss:$8 sps:$4 sm:$0xff]  }
  0x24   :  { %866 = vmatprep.subr.bf16.mxu0 %v1002_v4  ;;  %976 = vmatprep.subr.bf16.mxu1 %v1002_v4  ;;  %v1011_v15 = vld [vmem:[#allocation5 + $0x8] sm:$0xff]   ;;  %v1013_v17 = vld [vmem:[#allocation5] sm:$0xff]   ;;  %v1024_v22 = vld [vmem:[#allocation2 + $0x10] ss:$8 sps:$4 sm:$0xff]  }
  0x25   :  { %528 = vmatprep.mubr.bf16.mxu1 %v1019_v12  ;;  %v1025_v23 = vld [vmem:[#allocation2 + $0x90] ss:$8 sps:$4 sm:$0xff]   ;;  %v1026_v24 = vld [vmem:[#allocation2 + $0x24] ss:$8 sps:$4 sm:$0xff]   ;;  %v1030_v26 = vld [vmem:[#allocation2 + $0x20] ss:$8 sps:$4 sm:$0xff]  }
  0x26   :  { %v1028_v25 = vld [vmem:[#allocation2 + $0xa4] ss:$8 sps:$4 sm:$0xff]   ;;  %v1031_v27 = vld [vmem:[#allocation2 + $0xa0] ss:$8 sps:$4 sm:$0xff]   ;;  %v1032_v28 = vld [vmem:[#allocation2 + $0x34] ss:$8 sps:$4 sm:$0xff]  }
  0x27   :  { %867 = vmatpush3.bf16.msra.mxu0 %v1003_v5  ;;  %984 = vmatpush3.bf16.msra.mxu1 %v1003_v5  ;;  %v1034_v29 = vld [vmem:[#allocation2 + $0xb4] ss:$8 sps:$4 sm:$0xff]   ;;  %v1036_v30 = vld [vmem:[#allocation2 + $0x30] ss:$8 sps:$4 sm:$0xff]   ;;  %v1038_v32 = vld [vmem:[#allocation2 + $0x44] ss:$8 sps:$4 sm:$0xff]  }
  0x28   :  { %868 = vmatprep.subr.bf16.mxu0 %v1004_v6  ;;  %977 = vmatprep.subr.bf16.mxu1 %v1004_v6  ;;  %v1037_v31 = vld [vmem:[#allocation2 + $0xb0] ss:$8 sps:$4 sm:$0xff]   ;;  %v1040_v33 = vld [vmem:[#allocation2 + $0xc4] ss:$8 sps:$4 sm:$0xff]   ;;  %v1042_v34 = vld [vmem:[#allocation2 + $0x40] ss:$8 sps:$4 sm:$0xff]  }
  0x29   :  { %v1043_v35 = vld [vmem:[#allocation2 + $0xc0] ss:$8 sps:$4 sm:$0xff]   ;;  %v1044_v36 = vld [vmem:[#allocation2 + $0x54] ss:$8 sps:$4 sm:$0xff]   ;;  %v1048_v38 = vld [vmem:[#allocation2 + $0x50] ss:$8 sps:$4 sm:$0xff]  }
  0x2a   :  { %v1046_v37 = vld [vmem:[#allocation2 + $0xd4] ss:$8 sps:$4 sm:$0xff]   ;;  %v1049_v39 = vld [vmem:[#allocation2 + $0xd0] ss:$8 sps:$4 sm:$0xff]   ;;  %v1050_v40 = vld [vmem:[#allocation2 + $0x64] ss:$8 sps:$4 sm:$0xff]  }
  0x2b   :  { %869 = vmatpush3.bf16.msra.mxu0 %v1005_v7  ;;  %985 = vmatpush3.bf16.msra.mxu1 %v1005_v7  ;;  %v1052_v41 = vld [vmem:[#allocation2 + $0xe4] ss:$8 sps:$4 sm:$0xff]   ;;  %v1054_v42 = vld [vmem:[#allocation2 + $0x60] ss:$8 sps:$4 sm:$0xff]   ;;  %v1056_v44 = vld [vmem:[#allocation2 + $0x74] ss:$8 sps:$4 sm:$0xff]  }
  0x2c   :  { %870 = vmatprep.subr.bf16.mxu0 %v1006_v8  ;;  %978 = vmatprep.subr.bf16.mxu1 %v1006_v8  ;;  %v1055_v43 = vld [vmem:[#allocation2 + $0xe0] ss:$8 sps:$4 sm:$0xff]   ;;  %v1058_v45 = vld [vmem:[#allocation2 + $0xf4] ss:$8 sps:$4 sm:$0xff]   ;;  %v1060_v46 = vld [vmem:[#allocation2 + $0x70] ss:$8 sps:$4 sm:$0xff]  }
  0x2d   :  { %v1061_v47 = vld [vmem:[#allocation2 + $0xf0] ss:$8 sps:$4 sm:$0xff]   ;;  %v1167_v54 = vld [vmem:[%s1209_s2] ss:$0 sm:$0xff]  ;;  %s1134_s2 = smov [#allocation7]  }
  0x2e   :  { %s800_s26 = sshll.u32 %s1134_s2, 4  ;;  %s801_s26 = int_to_ptr.vmem [resolvable:$true] %s800_s26 }
  0x2f   :  { %871 = vmatpush3.bf16.msra.mxu0 %v1007_v9  ;;  %986 = vmatpush3.bf16.msra.mxu1 %v1007_v9  ;;  %s1102_s27 = scalar_lea.vmem %s801_s26, 4096  ;;  %p1107_p11 = scmp.lt.s32.totalorder %s801_s26, %s801_s26 }
  0x30   :  { %872 = vmatprep.subr.bf16.mxu0 %v1008_v10  ;;  %979 = vmatprep.subr.bf16.mxu1 %v1008_v10  ;;  %p1103_p10 = scmp.ne.s32.totalorder %s801_s26, %s1102_s27  ;;  %p1108_p12 = scmp.lt.s32.totalorder %s1102_s27, %s1102_s27 }
  0x32   :  { %p1109_p13 = por %p1108_p12, %p1107_p11 }
  0x33   :  { %873 = vmatpush3.bf16.msra.mxu0 %v1009_v13  ;;  %987 = vmatpush3.bf16.msra.mxu1 %v1009_v13 }
  0x34   :  { %874 = vmatprep.subr.bf16.mxu0 %v1010_v14  ;;  %980 = vmatprep.subr.bf16.mxu1 %v1010_v14  ;;  %p1110_p0 = pnand %p1109_p13, %p1103_p10 }
  0x37   :  { %875 = vmatpush3.bf16.msra.mxu0 %v1011_v15  ;;  %988 = vmatpush3.bf16.msra.mxu1 %v1011_v15 }
  0x38   :  { %876 = vmatprep.subr.bf16.mxu0 %v1012_v16  ;;  %981 = vmatprep.subr.bf16.mxu1 %v1012_v16 }
  0x3b   :  { %877 = vmatpush3.bf16.msra.mxu0 %v1013_v17  ;;  %989 = vmatpush3.bf16.msra.mxu1 %v1013_v17 }
  0x3e   :  { %465 = vmatmul.mubr.bf16.vlgmr.msra.gmra.mxu0 %v1014_v18  ;;  %529 = vmatmul.mubr.bf16.vlgmr.msra.gmra.mxu1 %v1017_v19 }
  0x3f   :  { %472 = vmatprep.mubr.bf16.mxu0 %v1020_v20  ;;  %536 = vmatprep.mubr.bf16.mxu1 %v1022_v21 }
  0x46   :  { %473 = vmatmul.mubr.bf16.gmra.mxu0 %v1024_v22  ;;  %537 = vmatmul.mubr.bf16.gmra.mxu1 %v1025_v23 }
  0x47   :  { %480 = vmatprep.mubr.bf16.mxu0 %v1026_v24  ;;  %544 = vmatprep.mubr.bf16.mxu1 %v1028_v25 }
  0x4e   :  { %481 = vmatmul.mubr.bf16.gmra.mxu0 %v1030_v26  ;;  %545 = vmatmul.mubr.bf16.gmra.mxu1 %v1031_v27 }
  0x4f   :  { %488 = vmatprep.mubr.bf16.mxu0 %v1032_v28  ;;  %552 = vmatprep.mubr.bf16.mxu1 %v1034_v29 }
  0x56   :  { %489 = vmatmul.mubr.bf16.gmra.mxu0 %v1036_v30  ;;  %553 = vmatmul.mubr.bf16.gmra.mxu1 %v1037_v31 }
  0x57   :  { %496 = vmatprep.mubr.bf16.mxu0 %v1038_v32  ;;  %560 = vmatprep.mubr.bf16.mxu1 %v1040_v33 }
  0x5e   :  { %497 = vmatmul.mubr.bf16.gmra.mxu0 %v1042_v34  ;;  %561 = vmatmul.mubr.bf16.gmra.mxu1 %v1043_v35 }
  0x5f   :  { %504 = vmatprep.mubr.bf16.mxu0 %v1044_v36  ;;  %568 = vmatprep.mubr.bf16.mxu1 %v1046_v37 }
  0x66   :  { %505 = vmatmul.mubr.bf16.gmra.mxu0 %v1048_v38  ;;  %569 = vmatmul.mubr.bf16.gmra.mxu1 %v1049_v39 }
  0x67   :  { %512 = vmatprep.mubr.bf16.mxu0 %v1050_v40  ;;  %576 = vmatprep.mubr.bf16.mxu1 %v1052_v41 }
  0x6e   :  { %513 = vmatmul.mubr.bf16.gmra.mxu0 %v1054_v42  ;;  %577 = vmatmul.mubr.bf16.gmra.mxu1 %v1055_v43 }
  0x6f   :  { %520 = vmatprep.mubr.bf16.mxu0 %v1056_v44  ;;  %584 = vmatprep.mubr.bf16.mxu1 %v1058_v45 }
  0x76   :  { %521 = vmatmul.mubr.bf16.gmra.mxu0 %v1060_v46  ;;  %585 = vmatmul.mubr.bf16.gmra.mxu1 %v1061_v47 }
  0xfe   :  { %v878_v48 = vpop.f32.mrf.mxu0  ;;  %v926_v49 = vpop.f32.mrf.mxu1 }
 0x100   :  { %v879_v50 = vpop.f32.mrf.mxu0  ;;  %v927_v51 = vpop.f32.mrf.mxu1 }
 0x101   :  { %v880_v52 = vadd.f32 %v879_v50, %v878_v48  ;;  %v928_v53 = vadd.f32 %v927_v51, %v926_v49 }
 0x102   :  { %v881_v55 = vpop.f32.mrf.mxu0  ;;  %v929_v56 = vpop.f32.mrf.mxu1 }
 0x103   :  { %v699_v59 = vadd.f32 %v880_v52, %v1167_v54  ;;  %v715_v60 = vadd.f32 %v928_v53, %v1167_v54 }
 0x104   :  { %v882_v57 = vpop.f32.mrf.mxu0  ;;  %v930_v58 = vpop.f32.mrf.mxu1 }
 0x105   :  { %v883_v61 = vadd.f32 %v882_v57, %v881_v55  ;;  %v931_v62 = vadd.f32 %v930_v58, %v929_v56  ;;  %v731_v1 = vmax.f32 %v699_v59, 0.0  ;;  %v747_v2 = vmax.f32 %v715_v60, 0.0 }
 0x106   :  { %v884_v63 = vpop.f32.mrf.mxu0  ;;  %v932_v0 = vpop.f32.mrf.mxu1 }
 0x107   :  { %763 = vst [vmem:[#allocation7] sm:$0xff] %v731_v1  ;;  %779 = vst [vmem:[#allocation7 + $0x80] sm:$0xff] %v747_v2  ;;  %v700_v5 = vadd.f32 %v883_v61, %v1167_v54  ;;  %v716_v6 = vadd.f32 %v931_v62, %v1167_v54 }
 0x108   :  { %v885_v3 = vpop.f32.mrf.mxu0  ;;  %v933_v4 = vpop.f32.mrf.mxu1 }
 0x109   :  { %v886_v7 = vadd.f32 %v885_v3, %v884_v63  ;;  %v934_v8 = vadd.f32 %v933_v4, %v932_v0  ;;  %v732_v11 = vmax.f32 %v700_v5, 0.0  ;;  %v748_v12 = vmax.f32 %v716_v6, 0.0 }
 0x10a   :  { %v887_v9 = vpop.f32.mrf.mxu0  ;;  %v935_v10 = vpop.f32.mrf.mxu1 }
 0x10b   :  { %764 = vst [vmem:[#allocation7 + $0x8] sm:$0xff] %v732_v11  ;;  %780 = vst [vmem:[#allocation7 + $0x88] sm:$0xff] %v748_v12  ;;  %v701_v15 = vadd.f32 %v886_v7, %v1167_v54  ;;  %v717_v16 = vadd.f32 %v934_v8, %v1167_v54 }
 0x10c   :  { %v888_v13 = vpop.f32.mrf.mxu0  ;;  %v936_v14 = vpop.f32.mrf.mxu1 }
 0x10d   :  { %v889_v17 = vadd.f32 %v888_v13, %v887_v9  ;;  %v937_v18 = vadd.f32 %v936_v14, %v935_v10  ;;  %v733_v21 = vmax.f32 %v701_v15, 0.0  ;;  %v749_v22 = vmax.f32 %v717_v16, 0.0 }
 0x10e   :  { %v890_v19 = vpop.f32.mrf.mxu0  ;;  %v938_v20 = vpop.f32.mrf.mxu1 }
 0x10f   :  { %765 = vst [vmem:[#allocation7 + $0x10] sm:$0xff] %v733_v21  ;;  %781 = vst [vmem:[#allocation7 + $0x90] sm:$0xff] %v749_v22  ;;  %v702_v25 = vadd.f32 %v889_v17, %v1167_v54  ;;  %v718_v26 = vadd.f32 %v937_v18, %v1167_v54 }
 0x110   :  { %v891_v23 = vpop.f32.mrf.mxu0  ;;  %v939_v24 = vpop.f32.mrf.mxu1 }
 0x111   :  { %v892_v27 = vadd.f32 %v891_v23, %v890_v19  ;;  %v940_v28 = vadd.f32 %v939_v24, %v938_v20  ;;  %v734_v31 = vmax.f32 %v702_v25, 0.0  ;;  %v750_v32 = vmax.f32 %v718_v26, 0.0 }
 0x112   :  { %v893_v29 = vpop.f32.mrf.mxu0  ;;  %v941_v30 = vpop.f32.mrf.mxu1 }
 0x113   :  { %766 = vst [vmem:[#allocation7 + $0x18] sm:$0xff] %v734_v31  ;;  %782 = vst [vmem:[#allocation7 + $0x98] sm:$0xff] %v750_v32  ;;  %v703_v35 = vadd.f32 %v892_v27, %v1167_v54  ;;  %v719_v36 = vadd.f32 %v940_v28, %v1167_v54 }
 0x114   :  { %v894_v33 = vpop.f32.mrf.mxu0  ;;  %v942_v34 = vpop.f32.mrf.mxu1 }
 0x115   :  { %v895_v37 = vadd.f32 %v894_v33, %v893_v29  ;;  %v943_v38 = vadd.f32 %v942_v34, %v941_v30  ;;  %v735_v41 = vmax.f32 %v703_v35, 0.0  ;;  %v751_v42 = vmax.f32 %v719_v36, 0.0 }
 0x116   :  { %v896_v39 = vpop.f32.mrf.mxu0  ;;  %v944_v40 = vpop.f32.mrf.mxu1 }
 0x117   :  { %767 = vst [vmem:[#allocation7 + $0x20] sm:$0xff] %v735_v41  ;;  %783 = vst [vmem:[#allocation7 + $0xa0] sm:$0xff] %v751_v42  ;;  %v704_v45 = vadd.f32 %v895_v37, %v1167_v54  ;;  %v720_v46 = vadd.f32 %v943_v38, %v1167_v54 }
 0x118   :  { %v897_v43 = vpop.f32.mrf.mxu0  ;;  %v945_v44 = vpop.f32.mrf.mxu1 }
 0x119   :  { %v898_v47 = vadd.f32 %v897_v43, %v896_v39  ;;  %v946_v48 = vadd.f32 %v945_v44, %v944_v40  ;;  %v736_v51 = vmax.f32 %v704_v45, 0.0  ;;  %v752_v52 = vmax.f32 %v720_v46, 0.0 }
 0x11a   :  { %v899_v49 = vpop.f32.mrf.mxu0  ;;  %v947_v50 = vpop.f32.mrf.mxu1 }
 0x11b   :  { %768 = vst [vmem:[#allocation7 + $0x28] sm:$0xff] %v736_v51  ;;  %784 = vst [vmem:[#allocation7 + $0xa8] sm:$0xff] %v752_v52  ;;  %v705_v56 = vadd.f32 %v898_v47, %v1167_v54  ;;  %v721_v57 = vadd.f32 %v946_v48, %v1167_v54 }
 0x11c   :  { %v900_v53 = vpop.f32.mrf.mxu0  ;;  %v948_v55 = vpop.f32.mrf.mxu1 }
 0x11d   :  { %v901_v58 = vadd.f32 %v900_v53, %v899_v49  ;;  %v949_v59 = vadd.f32 %v948_v55, %v947_v50  ;;  %v737_v62 = vmax.f32 %v705_v56, 0.0  ;;  %v753_v63 = vmax.f32 %v721_v57, 0.0 }
 0x11e   :  { %v902_v60 = vpop.f32.mrf.mxu0  ;;  %v950_v61 = vpop.f32.mrf.mxu1 }
 0x11f   :  { %769 = vst [vmem:[#allocation7 + $0x30] sm:$0xff] %v737_v62  ;;  %785 = vst [vmem:[#allocation7 + $0xb0] sm:$0xff] %v753_v63  ;;  %v706_v2 = vadd.f32 %v901_v58, %v1167_v54  ;;  %v722_v3 = vadd.f32 %v949_v59, %v1167_v54 }
 0x120   :  { %v903_v0 = vpop.f32.mrf.mxu0  ;;  %v951_v1 = vpop.f32.mrf.mxu1 }
 0x121   :  { %v904_v4 = vadd.f32 %v903_v0, %v902_v60  ;;  %v952_v5 = vadd.f32 %v951_v1, %v950_v61  ;;  %v738_v8 = vmax.f32 %v706_v2, 0.0  ;;  %v754_v9 = vmax.f32 %v722_v3, 0.0 }
 0x122   :  { %v905_v6 = vpop.f32.mrf.mxu0  ;;  %v953_v7 = vpop.f32.mrf.mxu1 }
 0x123   :  { %770 = vst [vmem:[#allocation7 + $0x38] sm:$0xff] %v738_v8  ;;  %786 = vst [vmem:[#allocation7 + $0xb8] sm:$0xff] %v754_v9  ;;  %v707_v12 = vadd.f32 %v904_v4, %v1167_v54  ;;  %v723_v13 = vadd.f32 %v952_v5, %v1167_v54 }
 0x124   :  { %v906_v10 = vpop.f32.mrf.mxu0  ;;  %v954_v11 = vpop.f32.mrf.mxu1 }
 0x125   :  { %v907_v14 = vadd.f32 %v906_v10, %v905_v6  ;;  %v955_v15 = vadd.f32 %v954_v11, %v953_v7  ;;  %v739_v18 = vmax.f32 %v707_v12, 0.0  ;;  %v755_v19 = vmax.f32 %v723_v13, 0.0 }
 0x126   :  { %v908_v16 = vpop.f32.mrf.mxu0  ;;  %v956_v17 = vpop.f32.mrf.mxu1 }
 0x127   :  { %771 = vst [vmem:[#allocation7 + $0x40] sm:$0xff] %v739_v18  ;;  %787 = vst [vmem:[#allocation7 + $0xc0] sm:$0xff] %v755_v19  ;;  %v708_v22 = vadd.f32 %v907_v14, %v1167_v54  ;;  %v724_v23 = vadd.f32 %v955_v15, %v1167_v54 }
 0x128   :  { %v909_v20 = vpop.f32.mrf.mxu0  ;;  %v957_v21 = vpop.f32.mrf.mxu1 }
 0x129   :  { %v910_v24 = vadd.f32 %v909_v20, %v908_v16  ;;  %v958_v25 = vadd.f32 %v957_v21, %v956_v17  ;;  %v740_v28 = vmax.f32 %v708_v22, 0.0  ;;  %v756_v29 = vmax.f32 %v724_v23, 0.0 }
 0x12a   :  { %v911_v26 = vpop.f32.mrf.mxu0  ;;  %v959_v27 = vpop.f32.mrf.mxu1 }
 0x12b   :  { %772 = vst [vmem:[#allocation7 + $0x48] sm:$0xff] %v740_v28  ;;  %788 = vst [vmem:[#allocation7 + $0xc8] sm:$0xff] %v756_v29  ;;  %v709_v32 = vadd.f32 %v910_v24, %v1167_v54  ;;  %v725_v33 = vadd.f32 %v958_v25, %v1167_v54 }
 0x12c   :  { %v912_v30 = vpop.f32.mrf.mxu0  ;;  %v960_v31 = vpop.f32.mrf.mxu1 }
 0x12d   :  { %v913_v34 = vadd.f32 %v912_v30, %v911_v26  ;;  %v961_v35 = vadd.f32 %v960_v31, %v959_v27  ;;  %v741_v38 = vmax.f32 %v709_v32, 0.0  ;;  %v757_v39 = vmax.f32 %v725_v33, 0.0 }
 0x12e   :  { %v914_v36 = vpop.f32.mrf.mxu0  ;;  %v962_v37 = vpop.f32.mrf.mxu1 }
 0x12f   :  { %773 = vst [vmem:[#allocation7 + $0x50] sm:$0xff] %v741_v38  ;;  %789 = vst [vmem:[#allocation7 + $0xd0] sm:$0xff] %v757_v39  ;;  %v710_v42 = vadd.f32 %v913_v34, %v1167_v54  ;;  %v726_v43 = vadd.f32 %v961_v35, %v1167_v54 }
 0x130   :  { %v915_v40 = vpop.f32.mrf.mxu0  ;;  %v963_v41 = vpop.f32.mrf.mxu1 }
 0x131   :  { %v916_v44 = vadd.f32 %v915_v40, %v914_v36  ;;  %v964_v45 = vadd.f32 %v963_v41, %v962_v37  ;;  %v742_v48 = vmax.f32 %v710_v42, 0.0  ;;  %v758_v49 = vmax.f32 %v726_v43, 0.0 }
 0x132   :  { %v917_v46 = vpop.f32.mrf.mxu0  ;;  %v965_v47 = vpop.f32.mrf.mxu1 }
 0x133   :  { %774 = vst [vmem:[#allocation7 + $0x58] sm:$0xff] %v742_v48  ;;  %790 = vst [vmem:[#allocation7 + $0xd8] sm:$0xff] %v758_v49  ;;  %v711_v52 = vadd.f32 %v916_v44, %v1167_v54  ;;  %v727_v53 = vadd.f32 %v964_v45, %v1167_v54 }
 0x134   :  { %v918_v50 = vpop.f32.mrf.mxu0  ;;  %v966_v51 = vpop.f32.mrf.mxu1 }
 0x135   :  { %v919_v55 = vadd.f32 %v918_v50, %v917_v46  ;;  %v967_v56 = vadd.f32 %v966_v51, %v965_v47  ;;  %v743_v59 = vmax.f32 %v711_v52, 0.0  ;;  %v759_v60 = vmax.f32 %v727_v53, 0.0 }
 0x136   :  { %v920_v57 = vpop.f32.mrf.mxu0  ;;  %v968_v58 = vpop.f32.mrf.mxu1 }
 0x137   :  { %775 = vst [vmem:[#allocation7 + $0x60] sm:$0xff] %v743_v59  ;;  %791 = vst [vmem:[#allocation7 + $0xe0] sm:$0xff] %v759_v60  ;;  %v712_v63 = vadd.f32 %v919_v55, %v1167_v54  ;;  %v728_v0 = vadd.f32 %v967_v56, %v1167_v54 }
 0x138   :  { %v921_v61 = vpop.f32.mrf.mxu0  ;;  %v969_v62 = vpop.f32.mrf.mxu1 }
 0x139   :  { %v922_v1 = vadd.f32 %v921_v61, %v920_v57  ;;  %v970_v2 = vadd.f32 %v969_v62, %v968_v58  ;;  %v744_v5 = vmax.f32 %v712_v63, 0.0  ;;  %v760_v6 = vmax.f32 %v728_v0, 0.0 }
 0x13a   :  { %v923_v3 = vpop.f32.mrf.mxu0  ;;  %v971_v4 = vpop.f32.mrf.mxu1 }
 0x13b   :  { %776 = vst [vmem:[#allocation7 + $0x68] sm:$0xff] %v744_v5  ;;  %792 = vst [vmem:[#allocation7 + $0xe8] sm:$0xff] %v760_v6  ;;  %v713_v9 = vadd.f32 %v922_v1, %v1167_v54  ;;  %v729_v10 = vadd.f32 %v970_v2, %v1167_v54 }
 0x13c   :  { %v924_v7 = vpop.f32.mrf.mxu0  ;;  %v972_v8 = vpop.f32.mrf.mxu1 }
 0x13d   :  { %v925_v11 = vadd.f32 %v924_v7, %v923_v3  ;;  %v973_v12 = vadd.f32 %v972_v8, %v971_v4  ;;  %v745_v13 = vmax.f32 %v713_v9, 0.0  ;;  %v761_v14 = vmax.f32 %v729_v10, 0.0 }
 0x13f   :  { %777 = vst [vmem:[#allocation7 + $0x70] sm:$0xff] %v745_v13  ;;  %793 = vst [vmem:[#allocation7 + $0xf0] sm:$0xff] %v761_v14  ;;  %v714_v15 = vadd.f32 %v925_v11, %v1167_v54  ;;  %v730_v16 = vadd.f32 %v973_v12, %v1167_v54 }
 0x141   :  { %v746_v17 = vmax.f32 %v714_v15, 0.0  ;;  %v762_v18 = vmax.f32 %v730_v16, 0.0 }
 0x143   :  { %778 = vst [vmem:[#allocation7 + $0x78] sm:$0xff] %v746_v17  ;;  %794 = vst [vmem:[#allocation7 + $0xf8] sm:$0xff] %v762_v18 }
 0x144   :  { %1113 = shalt.err (!%p1110_p0)
}
 0x145   :  { %806 = dma.vmem_to_hbm [thread:$0]  %s801_s26, 4096, %s1210_s3, [#allocation4], %s1129_s15, %s1129_s15, %s1130_s16  }
 0x146   :  { %1126 = dma.done.wait [#allocation4], 4096  }
 0x147   :  { %1127 = vsyncadd [#allocation4], 4294963200 }
 0x148   :  { %810 = vsyncpa [#allocation3], 1 }
 0x149   :  { %811 = vsyncpa [#allocation6], 1 }
 0x14a   :  { %812 = vsyncpa [#allocation4], 1 }

</bundles_post_ra>
